<compile_context>
chip_gen: v5e
topology: v5e:2x2
jax: 0.10.0
libtpu: 0.0.40
codegen_flags: <defaults>
</compile_context>

<pallas_src>
import math

import jax
import jax.numpy as jnp
import numpy as np
from jax.experimental import pallas as pl
from jax.experimental.pallas import tpu as pltpu


def _bernoulli_logprob(x, t):
    """log-prob of Bernoulli(target=t) under sigmoid(x) logits.

    Single-softplus form (one exp + log1p per element):
        log sigmoid(x)      = -softplus(-x)
        log(1 - sigmoid(x)) = -softplus(-x) - x
    Matches -F.binary_cross_entropy(sigmoid(x), t, reduction='none'),
    including PyTorch's clamp of each log term at -100.
    """
    sp = jax.nn.softplus(-x)
    log_p = jnp.maximum(-sp, -100.0)
    log_1mp = jnp.maximum(-sp - x, -100.0)
    return log_1mp + t * (log_p - log_1mp)


def _ssn_mc_kernel(mean_ref, covf_ref, covd_ref, tgt_ref, epsf_ref, epsd_ref,
                   ll_ref, acc_ref):
    # grid = (B, D // d_tile); axis 1 is the reduction over D tiles.
    dt = pl.program_id(1)
    f32 = jnp.float32

    @pl.when(dt == 0)
    def _():
        acc_ref[...] = jnp.zeros_like(acc_ref)

    mean = mean_ref[0]                        # (1, TD)  f32
    covd = covd_ref[0]                        # (1, TD)  f32
    tgt = tgt_ref[0].astype(f32)              # (1, TD)  bf16 -> f32
    covf = covf_ref[0].astype(f32)            # (R, TD)  bf16 -> f32
    epsf = epsf_ref[0]                        # (S, R)   f32, antithetic-stacked
    epsd = epsd_ref[0].astype(f32)            # (S, TD)  bf16 -> f32, stacked

    # rsample for all S antithetic samples, restricted to this D tile.
    # The low-rank projection runs on the (otherwise idle) MXU; everything
    # below operates on (S, TD) = (8, TD) tensors so every vreg is full.
    noise = jnp.dot(epsf, covf, preferred_element_type=f32)     # (S, TD)
    x = mean + noise + jnp.sqrt(covd) * epsd                    # (S, TD)

    lp = _bernoulli_logprob(x, tgt)                             # (S, TD)

    # Lane-wide accumulation (pure VPU add); the cross-lane (XLU) reduction is
    # deferred to the final D tile.
    acc_ref[...] += lp

    @pl.when(dt == pl.num_programs(1) - 1)
    def _():
        ll_ref[0] = jnp.sum(acc_ref[...], axis=-1, keepdims=True)   # (S, 1)


def _pick_d_tile(D, R, S2, vmem_budget_bytes=8 << 20):
    """Largest event-dim tile that divides D, is lane-aligned (multiple of 128
    or the full dim) and keeps the double-buffered working set well inside the
    default scoped VMEM on every generation (v5e: 16 MiB scoped, v6e: 32 MiB,
    v7x: 32 MiB scoped / 64 MiB physical)."""
    S = 2 * S2
    # VMEM bytes per unit of d: double-buffered inputs (f32 mean + f32 cov_diag,
    # bf16 target + bf16 cov_factor^T + bf16 stacked eps_d) plus the
    # single-buffered f32 (S, d) accumulator scratch.
    per_d = 2 * (4 + 4 + 2 + 2 * R + 2 * S) + 4 * S
    cap = max(128, (vmem_budget_bytes // per_d) // 128 * 128)
    if D <= cap:
        return D                       # one full-width tile (always legal)
    if D % 128 == 0:
        for t in range(cap, 0, -128):
            if D % t == 0:
                return t
    # TODO(synk): pad the event dim to a multiple of 128 instead of falling
    # back to a single full-width tile for large, oddly shaped C*H*W.
    return D


def ssn_mc_loss(logits, target, mean, cov_factor, cov_diag, eps_f, eps_d,
                num_mc_samples, *, d_tile=None):
    """Forward pass of StochasticSegmentationNetworkLossMCIntegral."""
    B, C, H, W = logits.shape
    assert C >= 2
    D = C * H * W
    S = num_mc_samples
    assert S % 2 == 0
    S2 = S // 2
    R = cov_factor.shape[-1]
    assert eps_f.shape == (B, S2, R)
    assert eps_d.shape[-1] == D and eps_d.shape[1] == S2

    if d_tile is None:
        d_tile = _pick_d_tile(D, R, S2)
    assert D % d_tile == 0
    assert d_tile == D or d_tile % 128 == 0

    f32 = jnp.float32
    bf16 = jnp.bfloat16

    # Small per-element operands stay f32; the big streams (cov_factor^T,
    # eps_d, target) are stored bf16 in HBM (target is 0/1 -> exact) and
    # upcast to f32 inside the kernel.
    mean3 = mean.reshape(B, 1, D).astype(f32)
    covd3 = cov_diag.reshape(B, 1, D).astype(f32)
    tgt3 = target.reshape(B, 1, D).astype(bf16)
    covf_t = jnp.transpose(cov_factor, (0, 2, 1)).astype(bf16)        # (B, R, D)
    # Antithetic ("fixed re-parametrization trick") stacking done once here so
    # the kernel works on sublane-full (S, TD) tensors with no in-kernel
    # shuffles: rows [0, S2) are +eps, rows [S2, S) are -eps.
    eps_f_s = jnp.concatenate([eps_f, -eps_f], axis=1).astype(f32)    # (B, S, R)
    eps_d_s = jnp.concatenate([eps_d, -eps_d], axis=1).astype(bf16)   # (B, S, D)

    grid = (B, D // d_tile)

    cost = pl.CostEstimate(
        flops=int(B * D * (2 * S * R + 6 * S)),
        transcendentals=int(B * D * (2 * S + 1)),     # exp+log1p per sample, sqrt
        bytes_accessed=int(B * D * (4 + 4 + 2 + 2 * R + 2 * S)
                           + B * S * R * 4 + B * S * 4),
    )

    # NOTE: B is the leading "parallel" axis so megacore/v7x can shard batches
    # across TensorCores.  If B == 1 in deployment, split the (independent)
    # sample dimension into a second parallel axis instead.
    ll = pl.pallas_call(
        _ssn_mc_kernel,
        out_shape=jax.ShapeDtypeStruct((B, S, 1), f32),
        grid_spec=pltpu.PrefetchScalarGridSpec(
            num_scalar_prefetch=0,
            grid=grid,
            in_specs=[
                pl.BlockSpec((1, 1, d_tile), lambda b, dt: (b, 0, dt)),   # mean
                pl.BlockSpec((1, R, d_tile), lambda b, dt: (b, 0, dt)),   # cov_factor^T
                pl.BlockSpec((1, 1, d_tile), lambda b, dt: (b, 0, dt)),   # cov_diag
                pl.BlockSpec((1, 1, d_tile), lambda b, dt: (b, 0, dt)),   # target
                pl.BlockSpec((1, S, R), lambda b, dt: (b, 0, 0)),         # eps_f (stacked)
                pl.BlockSpec((1, S, d_tile), lambda b, dt: (b, 0, dt)),   # eps_d (stacked)
            ],
            out_specs=pl.BlockSpec((1, S, 1), lambda b, dt: (b, 0, 0)),
            scratch_shapes=[pltpu.VMEM((S, d_tile), jnp.float32)],
        ),
        compiler_params=pltpu.CompilerParams(
            dimension_semantics=("parallel", "arbitrary")),
        cost_estimate=cost,
    )(mean3, covf_t, covd3, tgt3, eps_f_s, eps_d_s)

    # ll[b, s, 0] = sum_d log p(target_d | sample_s); s < S2 -> +noise,
    # s >= S2 -> -noise (ordering irrelevant for logsumexp).
    per_sample_ll = ll[..., 0]                                   # (B, S)
    loglikelihood = jnp.mean(
        jax.scipy.special.logsumexp(per_sample_ll, axis=1) - math.log(S))
    return -loglikelihood


def _reference_loss(mean, cov_factor, cov_diag, target, eps_f, eps_d, S):
    """Pure-JAX reference of the PyTorch forward (same noise realization)."""
    B, D = mean.shape
    noise = (jnp.einsum('bdr,bsr->sbd', cov_factor, eps_f)
             + jnp.sqrt(cov_diag)[None] * jnp.transpose(eps_d, (1, 0, 2)))
    samples = jnp.concatenate([mean[None] + noise, mean[None] - noise], axis=0)
    t = target.reshape(1, B, D)
    lp = _bernoulli_logprob(samples, t)
    ll = jnp.sum(lp, axis=-1)                      # (S, B)
    return -jnp.mean(jax.scipy.special.logsumexp(ll, axis=0) - math.log(S))


if __name__ == "__main__":
    B, C, H, W = 2, 4, 16, 16
    D = C * H * W
    R = 8                      # low-rank factor of the SSN covariance
    num_mc_samples = 8         # must be even for the fixed re-param trick
    S2 = num_mc_samples // 2

    key = jax.random.PRNGKey(0)
    k_logits, k_tgt, k_cf, k_cd, k_ef, k_ed = jax.random.split(key, 6)

    logits = jax.random.normal(k_logits, (B, C, H, W), jnp.float32)
    target = jax.random.bernoulli(k_tgt, 0.5, (B, C, H, W)).astype(jnp.float32)

    # Deterministic synthetic distribution parameters (SSN low-rank Gaussian).
    mean = logits.reshape(B, D)
    cov_factor = 0.1 * jax.random.normal(k_cf, (B, D, R), jnp.float32)
    cov_diag = 0.1 + 0.4 * jax.random.uniform(k_cd, (B, D), jnp.float32)

    # Base standard-normal noise for rsample (drawn once, shared with ref).
    eps_f = jax.random.normal(k_ef, (B, S2, R), jnp.float32)
    eps_d = jax.random.normal(k_ed, (B, S2, D), jnp.float32)

    # The kernel streams cov_factor / eps_d from HBM as bf16; round them here
    # so the f32 reference sees the identical noise realization and the
    # comparison isolates the kernel math (target is 0/1, exact in bf16).
    bf16_round = lambda a: a.astype(jnp.bfloat16).astype(jnp.float32)
    cov_factor = bf16_round(cov_factor)
    eps_d = bf16_round(eps_d)

    loss = ssn_mc_loss(logits, target, mean, cov_factor, cov_diag,
                       eps_f, eps_d, num_mc_samples)
    loss = jax.block_until_ready(loss)

    ref = _reference_loss(mean, cov_factor, cov_diag, target, eps_f, eps_d,
                          num_mc_samples)
    ref = jax.block_until_ready(ref)

    if not np.allclose(np.asarray(loss), np.asarray(ref), rtol=2e-4, atol=1e-3):
        raise AssertionError(f"mismatch: kernel={loss} ref={ref}")

    print("KERNEL_OK")
</pallas_src>

<mosaic_0001>
module attributes {stable_mosaic.version = 11 : i64} {
  func.func @_ssn_mc_kernel(%arg0: i32, %arg1: i32, %arg2: memref<1x1x1024xf32, #tpu.memory_space<vmem>>, %arg3: memref<1x8x1024xbf16, #tpu.memory_space<vmem>>, %arg4: memref<1x1x1024xf32, #tpu.memory_space<vmem>>, %arg5: memref<1x1x1024xbf16, #tpu.memory_space<vmem>>, %arg6: memref<1x8x8xf32, #tpu.memory_space<vmem>>, %arg7: memref<1x8x1024xbf16, #tpu.memory_space<vmem>>, %arg8: memref<1x8x1xf32, #tpu.memory_space<vmem>>, %arg9: memref<8x1024xf32, #tpu.memory_space<vmem>>) attributes {dimension_semantics = [#tpu.dimension_semantics<parallel>, #tpu.dimension_semantics<arbitrary>], iteration_bounds = array<i64: 2, 1>, scalar_prefetch = 0 : i64, scratch_operands = 1 : i64, tpu.core_type = #tpu.core_type<tc>, window_params = [{transform_indices = @transform_0, window_bounds = array<i64: 1, 1, 1024>}, {transform_indices = @transform_1, window_bounds = array<i64: 1, 8, 1024>}, {transform_indices = @transform_2, window_bounds = array<i64: 1, 1, 1024>}, {transform_indices = @transform_3, window_bounds = array<i64: 1, 1, 1024>}, {transform_indices = @transform_4, window_bounds = array<i64: 1, 8, 8>}, {transform_indices = @transform_5, window_bounds = array<i64: 1, 8, 1024>}, {transform_indices = @transform_6, window_bounds = array<i64: 1, 8, 1>}]} {
    %c0_i32 = arith.constant 0 : i32
    %0 = arith.cmpi eq, %arg1, %c0_i32 : i32
    %1 = arith.extui %0 : i1 to i32
    %c0_i32_0 = arith.constant 0 : i32
    %2 = arith.cmpi ne, %1, %c0_i32_0 : i32
    scf.if %2 {
      %cst_31 = arith.constant 0.000000e+00 : f32
      %60 = vector.broadcast %cst_31 : f32 to vector<8x1024xf32>
      %c0_32 = arith.constant 0 : index
      %c0_33 = arith.constant 0 : index
      %61 = vector.load %arg9[%c0_32, %c0_33] : memref<8x1024xf32, #tpu.memory_space<vmem>>, vector<8x1024xf32>
      tpu.vector_store %arg9[%c0_32, %c0_33], %60 {strides = array<i32>} : memref<8x1024xf32, #tpu.memory_space<vmem>>, vector<8x1024xf32>,
    } else {
    }
    %c0 = arith.constant 0 : index
    %c0_1 = arith.constant 0 : index
    %c0_2 = arith.constant 0 : index
    %3 = vector.load %arg2[%c0, %c0_1, %c0_2] : memref<1x1x1024xf32, #tpu.memory_space<vmem>>, vector<1x1x1024xf32>
    %4 = vector.shape_cast %3 : vector<1x1x1024xf32> to vector<1x1024xf32>
    %c0_3 = arith.constant 0 : index
    %c0_4 = arith.constant 0 : index
    %c0_5 = arith.constant 0 : index
    %5 = vector.load %arg4[%c0_3, %c0_4, %c0_5] : memref<1x1x1024xf32, #tpu.memory_space<vmem>>, vector<1x1x1024xf32>
    %6 = vector.shape_cast %5 : vector<1x1x1024xf32> to vector<1x1024xf32>
    %c0_6 = arith.constant 0 : index
    %c0_7 = arith.constant 0 : index
    %c0_8 = arith.constant 0 : index
    %7 = vector.load %arg5[%c0_6, %c0_7, %c0_8] : memref<1x1x1024xbf16, #tpu.memory_space<vmem>>, vector<1x1x1024xbf16>
    %8 = vector.shape_cast %7 : vector<1x1x1024xbf16> to vector<1x1024xbf16>
    %9 = arith.extf %8 : vector<1x1024xbf16> to vector<1x1024xf32>
    %c0_9 = arith.constant 0 : index
    %c0_10 = arith.constant 0 : index
    %c0_11 = arith.constant 0 : index
    %10 = vector.load %arg3[%c0_9, %c0_10, %c0_11] : memref<1x8x1024xbf16, #tpu.memory_space<vmem>>, vector<1x8x1024xbf16>
    %11 = vector.shape_cast %10 : vector<1x8x1024xbf16> to vector<8x1024xbf16>
    %12 = arith.extf %11 : vector<8x1024xbf16> to vector<8x1024xf32>
    %c0_12 = arith.constant 0 : index
    %c0_13 = arith.constant 0 : index
    %c0_14 = arith.constant 0 : index
    %13 = vector.load %arg6[%c0_12, %c0_13, %c0_14] : memref<1x8x8xf32, #tpu.memory_space<vmem>>, vector<1x8x8xf32>
    %14 = vector.shape_cast %13 : vector<1x8x8xf32> to vector<8x8xf32>
    %c0_15 = arith.constant 0 : index
    %c0_16 = arith.constant 0 : index
    %c0_17 = arith.constant 0 : index
    %15 = vector.load %arg7[%c0_15, %c0_16, %c0_17] : memref<1x8x1024xbf16, #tpu.memory_space<vmem>>, vector<1x8x1024xbf16>
    %16 = vector.shape_cast %15 : vector<1x8x1024xbf16> to vector<8x1024xbf16>
    %17 = arith.extf %16 : vector<8x1024xbf16> to vector<8x1024xf32>
    %cst = arith.constant dense<0.000000e+00> : vector<8x1024xf32>
    %18 = tpu.matmul %14, %12, %cst {dimension_numbers = #tpu.dot_dimension_numbers<[1], [0], [0], [1], [0, 0, 1, 1], [], []>} : vector<8x8xf32>, vector<8x1024xf32>, vector<8x1024xf32> -> vector<8x1024xf32>
    %19 = vector.broadcast %4 : vector<1x1024xf32> to vector<8x1024xf32>
    %20 = arith.addf %19, %18 : vector<8x1024xf32>
    %21 = math.sqrt %6 : vector<1x1024xf32>
    %22 = vector.broadcast %21 : vector<1x1024xf32> to vector<8x1024xf32>
    %23 = arith.mulf %22, %17 : vector<8x1024xf32>
    %24 = arith.addf %20, %23 : vector<8x1024xf32>
    %cst_18 = arith.constant 0.000000e+00 : f32
    %25 = vector.broadcast %cst_18 : f32 to vector<8x1024xf32>
    %26 = arith.subf %25, %24 : vector<8x1024xf32>
    %cst_19 = arith.constant 0.000000e+00 : f32
    %27 = vector.broadcast %cst_19 : f32 to vector<8x1024xf32>
    %28 = arith.maximumf %26, %27 : vector<8x1024xf32>
    %29 = vector.broadcast %cst_19 : f32 to vector<8x1024xf32>
    %30 = arith.subf %26, %29 : vector<8x1024xf32>
    %31 = arith.cmpf one, %30, %30 : vector<8x1024xf32>
    %32 = vector.broadcast %cst_19 : f32 to vector<8x1024xf32>
    %33 = arith.addf %26, %32 : vector<8x1024xf32>
    %34 = math.absf %30 : vector<8x1024xf32>
    %cst_20 = arith.constant 0.000000e+00 : f32
    %35 = vector.broadcast %cst_20 : f32 to vector<8x1024xf32>
    %36 = arith.subf %35, %34 : vector<8x1024xf32>
    %37 = math.exp %36 : vector<8x1024xf32>
    %38 = math.log1p %37 : vector<8x1024xf32>
    %39 = arith.addf %28, %38 : vector<8x1024xf32>
    %40 = arith.select %31, %33, %39 : vector<8x1024xi1>, vector<8x1024xf32>
    %cst_21 = arith.constant 0.000000e+00 : f32
    %41 = vector.broadcast %cst_21 : f32 to vector<8x1024xf32>
    %42 = arith.subf %41, %40 : vector<8x1024xf32>
    %cst_22 = arith.constant -1.000000e+02 : f32
    %43 = vector.broadcast %cst_22 : f32 to vector<8x1024xf32>
    %44 = arith.maximumf %42, %43 : vector<8x1024xf32>
    %cst_23 = arith.constant 0.000000e+00 : f32
    %45 = vector.broadcast %cst_23 : f32 to vector<8x1024xf32>
    %46 = arith.subf %45, %40 : vector<8x1024xf32>
    %47 = arith.subf %46, %24 : vector<8x1024xf32>
    %cst_24 = arith.constant -1.000000e+02 : f32
    %48 = vector.broadcast %cst_24 : f32 to vector<8x1024xf32>
    %49 = arith.maximumf %47, %48 : vector<8x1024xf32>
    %50 = arith.subf %44, %49 : vector<8x1024xf32>
    %51 = vector.broadcast %9 : vector<1x1024xf32> to vector<8x1024xf32>
    %52 = arith.mulf %51, %50 : vector<8x1024xf32>
    %53 = arith.addf %49, %52 : vector<8x1024xf32>
    %c0_25 = arith.constant 0 : index
    %c0_26 = arith.constant 0 : index
    %54 = vector.load %arg9[%c0_25, %c0_26] : memref<8x1024xf32, #tpu.memory_space<vmem>>, vector<8x1024xf32>
    %55 = arith.addf %54, %53 : vector<8x1024xf32>
    %c0_27 = arith.constant 0 : index
    %c0_28 = arith.constant 0 : index
    %56 = vector.load %arg9[%c0_27, %c0_28] : memref<8x1024xf32, #tpu.memory_space<vmem>>, vector<8x1024xf32>
    tpu.vector_store %arg9[%c0_27, %c0_28], %55 {strides = array<i32>} : memref<8x1024xf32, #tpu.memory_space<vmem>>, vector<8x1024xf32>,
    %c0_i32_29 = arith.constant 0 : i32
    %57 = arith.cmpi eq, %arg1, %c0_i32_29 : i32
    %58 = arith.extui %57 : i1 to i32
    %c0_i32_30 = arith.constant 0 : i32
    %59 = arith.cmpi ne, %58, %c0_i32_30 : i32
    scf.if %59 {
      %c0_31 = arith.constant 0 : index
      %c0_32 = arith.constant 0 : index
      %60 = vector.load %arg9[%c0_31, %c0_32] : memref<8x1024xf32, #tpu.memory_space<vmem>>, vector<8x1024xf32>
      %cst_33 = arith.constant dense<0.000000e+00> : vector<8xf32>
      %61 = vector.multi_reduction <add>, %60, %cst_33 [1] : vector<8x1024xf32> to vector<8xf32>
      %62 = vector.shape_cast %61 : vector<8xf32> to vector<8x1xf32>
      %c0_34 = arith.constant 0 : index
      %c0_35 = arith.constant 0 : index
      %c0_36 = arith.constant 0 : index
      %63 = vector.load %arg8[%c0_34, %c0_35, %c0_36] : memref<1x8x1xf32, #tpu.memory_space<vmem>>, vector<1x8x1xf32>
      %64 = vector.shape_cast %63 : vector<1x8x1xf32> to vector<8x1xf32>
      %65 = vector.shape_cast %62 : vector<8x1xf32> to vector<1x8x1xf32>
      tpu.vector_store %arg8[%c0_34, %c0_35, %c0_36], %65 {strides = array<i32>} : memref<1x8x1xf32, #tpu.memory_space<vmem>>, vector<1x8x1xf32>,
    } else {
    }
    return
  }
  func.func @transform_0(%arg0: i32, %arg1: i32) -> (i32, i32, i32) {
    %c0_i32 = arith.constant 0 : i32
    %c0_i32_0 = arith.constant 0 : i32
    return %arg0, %c0_i32, %arg1 : i32, i32, i32
  }
  func.func @transform_1(%arg0: i32, %arg1: i32) -> (i32, i32, i32) {
    %c0_i32 = arith.constant 0 : i32
    %c0_i32_0 = arith.constant 0 : i32
    return %arg0, %c0_i32, %arg1 : i32, i32, i32
  }
  func.func @transform_2(%arg0: i32, %arg1: i32) -> (i32, i32, i32) {
    %c0_i32 = arith.constant 0 : i32
    %c0_i32_0 = arith.constant 0 : i32
    return %arg0, %c0_i32, %arg1 : i32, i32, i32
  }
  func.func @transform_3(%arg0: i32, %arg1: i32) -> (i32, i32, i32) {
    %c0_i32 = arith.constant 0 : i32
    %c0_i32_0 = arith.constant 0 : i32
    return %arg0, %c0_i32, %arg1 : i32, i32, i32
  }
  func.func @transform_4(%arg0: i32, %arg1: i32) -> (i32, i32, i32) {
    %c0_i32 = arith.constant 0 : i32
    %c0_i32_0 = arith.constant 0 : i32
    %c0_i32_1 = arith.constant 0 : i32
    return %arg0, %c0_i32, %c0_i32_0 : i32, i32, i32
  }
  func.func @transform_5(%arg0: i32, %arg1: i32) -> (i32, i32, i32) {
    %c0_i32 = arith.constant 0 : i32
    %c0_i32_0 = arith.constant 0 : i32
    return %arg0, %c0_i32, %arg1 : i32, i32, i32
  }
  func.func @transform_6(%arg0: i32, %arg1: i32) -> (i32, i32, i32) {
    %c0_i32 = arith.constant 0 : i32
    %c0_i32_0 = arith.constant 0 : i32
    %c0_i32_1 = arith.constant 0 : i32
    return %arg0, %c0_i32, %c0_i32_0 : i32, i32, i32
  }
}

</mosaic_0001>

<bundles_post_ra>
// kernel: tpu_custom_call.1
= control target key start
LH: loop header
LB: loop body
LE: loop exit
PB: predicated region body
PF: predicated region fallthrough
CT: control target
= control target key end

     0   :  { %s1856_s0 = inlined_call_operand.vmem [shape: f32[2,1,1024], index: 0, kind: input, shape index: {}]   ;;  %s1857_s1 = inlined_call_operand.hbm [shape: bf16[2,8,1024], index: 1, kind: input, shape index: {}]   ;;  %s1858_s2 = inlined_call_operand.hbm [shape: f32[2,1,1024], index: 2, kind: input, shape index: {}]   ;;  %s1859_s3 = inlined_call_operand.vmem [shape: bf16[2,1,1024], index: 3, kind: input, shape index: {}]   ;;  %s1860_s4 = inlined_call_operand.hbm [shape: f32[2,8,8], index: 4, kind: input, shape index: {}]   ;;  %s1861_s5 = inlined_call_operand.hbm [shape: bf16[2,8,1024], index: 5, kind: input, shape index: {}]   ;;  %s1862_s6 = inlined_call_operand.vmem [shape: f32[2,8,1], index: 6, kind: output, shape index: {}]  }
   0x1   :  { %1866 = sst [smem:[#allocation15_spill]] %s1857_s1 }
   0x2   :  { %1867 = sst [smem:[#allocation16_spill]] %s1858_s2 }
   0x3   :  { %1868 = sst [smem:[#allocation17_spill]] %s1860_s4 }
   0x4   :  { %11 = vsyncpa [#allocation4], 0 }
   0x5   :  { %13 = vsyncpa [#allocation4 + $0x1], 0 }
   0x6   :  { %14 = vsyncpa [#allocation6], 0 }
   0x7   :  { %16 = vsyncpa [#allocation6 + $0x1], 0 }
   0x8   :  { %17 = vsyncpa [#allocation9], 0 }
   0x9   :  { %19 = vsyncpa [#allocation9 + $0x1], 0  ;;  %s1564_s21 = smov 0   ;;  %s1566_s22 = smov 0  }
   0xa   :  { %s1568_s23 = smov 0   ;;  %s1570_s24 = smov 0  }
   0xb   :  { %s1572_s25 = smov 0   ;;  %s1574_s26 = smov 0  }
   0xc LB: > { %1869 = sst [smem:[#allocation13_spill]] %s1523_s25  ;;  %s1863_s27 = sadd.s32 4294967295, %s1527_s26   ;;  %s1527_s26 = sphi %s1574_s26, %s25_s26   ;;  %s1523_s25 = sphi %s1572_s25, %s1883_s25   ;;  %s1519_s24 = sphi %s1570_s24, %s1882_s24   ;;  %s1515_s23 = sphi %s1568_s23, %s1886_s23   ;;  %s1511_s22 = sphi %s1566_s22, %s1885_s22   ;;  %s1507_s21 = sphi %s1564_s21, %s1884_s21  }
   0xd   : > { %s37_s28 = sadd.s32 1, %s1523_s25  ;;  %s74_s29 = sadd.s32 1, %s1515_s23 }
   0xe   : > { %p39_p0 = scmp.ge.s32.totalorder %s37_s28, 2  ;;  %p81_p1 = scmp.ne.s32.totalorder %s1515_s23, %s1511_s22 }
   0xf   : > { %p82_p2 = scmp.eq.s32.totalorder %s1527_s26, 0  ;;  %p87_p4 = scmp.ne.s32.totalorder %s1511_s22, %s1507_s21 }
  0x10   : > { %s1888_s28 = smov (%p39_p0, %s37_s28), 0  ;;  %p88_p5 = scmp.eq.s32.totalorder %s1863_s27, 0 }
  0x11   : > { %1870 = sst [smem:[#allocation14_spill]] %s1888_s28  ;;  %p83_p3 = por %p82_p2, %p81_p1 }
  0x12   : > { %s69_s30 = ssub.s32 %s1523_s25, %s1888_s28  ;;  %p1605_p7 = por %p88_p5, %p87_p4 }
  0x13   : > { %p72_p6 = scmp.eq.s32.totalorder %s69_s30, 0  ;;  %p1266_p8 = scmp.lt.s32.totalorder %s1527_s26, 2 }
  0x14   : > { %s1614_s9 = sand.u32 1, %s1515_s23   ;;  %s281_s11 = sand.u32 1, %s1527_s26  }
  0x15   : > { %s1611_s8 = scalar_select %p72_p6, %s1515_s23, %s74_s29  }
  0x16   : > { %p1616_p9 = pnand %p1266_p8, %p83_p3  ;;  %s1218_s12 = sshll.u32 %s1614_s9, 3 }
  0x17   : > { %s1219_s13 = sshll.u32 %s1523_s25, 3  ;;  %s1873_s2 = sld [smem:[#allocation16_spill]] }
  0x18   : > { %s285_s17 = scalar_lea.vmem [#allocation5], %s1218_s12  ;;  %s282_s20 = scalar_lea.sflag [#allocation6], %s281_s11 }
  0x19   : > { %s295_s18 = sshll.u32 %s285_s17, 4  ;;  %s1874_s4 = sld [smem:[#allocation17_spill]]  ;;  %s296_s18 = int_to_ptr.vmem [resolvable:$true] %s295_s18 }
  0x1a   : > { %p1225_p10 = scmp.ge.s32.totalorder %s1527_s26, 1  ;;  %p353_p11 = scmp.lt.s32.totalorder %s1527_s26, 3 }
  0x1b   : > { %s1215_s14 = sshll.u32 %s1614_s9, 5  ;;  %s1243_s15 = sshll.u32 %s1523_s25, 5 }
  0x1c   : > { %p1633_p12 = pnand %p1225_p10, %p353_p11  ;;  %s1876_s1 = sld [smem:[#allocation15_spill]] }
  0x1d   : > { %s291_s16 = scalar_lea.hbm %s1873_s2, %s1219_s13  ;;  %s263_s2 = scalar_lea.vmem [#allocation3], %s1215_s14 }
  0x1e   : > { %s293_s19 = sshll.u32 %s291_s16, 4  ;;  %s274_s28 = sshll.u32 %s263_s2, 4  ;;  %s294_s19 = int_to_ptr.hbm [resolvable:$true] %s293_s19  ;;  %s275_s28 = int_to_ptr.vmem [resolvable:$true] %s274_s28 }
  0x1f   : > { %1259 = dma.hbm_to_vmem [thread:$0]  (!%p1616_p9), %s294_s19, 128, %s296_s18, %s282_s20  }
  0x20   : > { %s322_s30 = scalar_lea.hbm %s1874_s4, %s1219_s13  ;;  %s260_s19 = scalar_lea.sflag [#allocation4], %s1614_s9 }
  0x21   : > { %s324_s13 = sshll.u32 %s322_s30, 4  ;;  %s318_s21 = scalar_lea.vmem [#allocation7], %s1218_s12  ;;  %s325_s13 = int_to_ptr.hbm [resolvable:$true] %s324_s13 }
  0x22   : > { %s270_s11 = scalar_lea.hbm %s1876_s1, %s1243_s15  ;;  %s326_s29 = sshll.u32 %s318_s21, 4  ;;  %s327_s29 = int_to_ptr.vmem [resolvable:$true] %s326_s29 }
  0x23   : > { %s272_s18 = sshll.u32 %s270_s11, 4  ;;  %s344_s17 = scalar_lea.hbm %s1861_s5, %s1243_s15  ;;  %s273_s18 = int_to_ptr.hbm [resolvable:$true] %s272_s18 }
  0x24   : > { %1256 = dma.hbm_to_vmem [thread:$0]  (!%p1616_p9), %s273_s18, 512, %s275_s28, %s260_s19  }
  0x25   : > { %1262 = dma.hbm_to_vmem [thread:$0]  (!%p1616_p9), %s325_s13, 128, %s327_s29, %s282_s20  }
  0x26   : > { %s346_s2 = sshll.u32 %s344_s17, 4  ;;  %s337_s11 = scalar_lea.vmem [#allocation8], %s1215_s14  ;;  %s347_s2 = int_to_ptr.hbm [resolvable:$true] %s346_s2 }
  0x27   : > { %s348_s1 = sshll.u32 %s337_s11, 4  ;;  %s334_s25 = scalar_lea.sflag [#allocation9], %s1614_s9  ;;  %s349_s1 = int_to_ptr.vmem [resolvable:$true] %s348_s1 }
  0x28   : > { %1265 = dma.hbm_to_vmem [thread:$0]  (!%p1616_p9), %s347_s2, 512, %s349_s1, %s334_s25  }
  0x29   : > { %357 = sbr.rel (%p1633_p12) target bundleno = 387 (0x183), region = 44  ;;  %s359_s28 = sand.u32 (!%p1633_p12), 1, %s1511_s22  }
  0x2a   : > { %s1226_s12 = sshll.u32 (!%p1633_p12), %s359_s28, 5  ;;  %s360_s20 = scalar_lea.sflag (!%p1633_p12), [#allocation4], %s359_s28 }
  0x2b   : > { %s363_s30 = scalar_lea.vmem (!%p1633_p12), [#allocation3], %s1226_s12 }
  0x2e   : > { %1494 = dma.done.wait (%p1605_p7), %s360_s20, 512  }
  0x2f   : > { %1496 = vsyncadd (%p1605_p7), %s360_s20, 4294966784  ;;  %s1877_s4 = sadd.s32 4294967295, %s1527_s26   ;;  %s1227_s10 = sshll.u32 %s359_s28, 3 }
  0x30   : > { %s369_s9 = sand.u32 1, %s1877_s4   ;;  %s1662_s25 = scalar_lea.vmem [#allocation5], %s1227_s10 }
  0x31   : > { %s370_s1 = scalar_lea.sflag [#allocation6], %s369_s9 }
  0x32   : > { %1498 = dma.done.wait (%p1605_p7), %s370_s1, 256  }
  0x33   : > { %1500 = vsyncadd (%p1605_p7), %s370_s1, 4294967040  ;;  %s383_s27 = scalar_lea.vmem [#allocation7], %s1227_s10  ;;  %s390_s14 = scalar_lea.sflag [#allocation9], %s359_s28 }
  0x34   : > { %s1668_s15 = scalar_lea.vmem [#allocation8], %s1226_s12 }
  0x35   : > { %1502 = dma.done.wait (%p1605_p7), %s390_s14, 512  }
  0x36   : > { %1504 = vsyncadd (%p1605_p7), %s390_s14, 4294966784  ;;  %v495_v0 = vld [vmem:[%s363_s30] sm:$0xff]  ;;  %v496_v1 = vld [vmem:[%s363_s30 + $0x8] sm:$0xff]  ;;  %vm520_vm0 = vcmask 64512   ;;  %p454_p13 = scmp.lt.s32.totalorder %s1519_s24, 1 }
  0x37   : > { %v499_v2 = vunpack.c.l.bf16 %v495_v0  ;;  %v500_v3 = vunpack.c.h.bf16 %v495_v0  ;;  %v501_v4 = vunpack.c.l.bf16 %v496_v1  ;;  %v502_v5 = vunpack.c.h.bf16 %v496_v1  ;;  %v498_v6 = vld [vmem:[%s363_s30 + $0x18] sm:$0xff]  ;;  %v497_v7 = vld [vmem:[%s363_s30 + $0x10] sm:$0xff]  ;;  %v491_v13 = vld [vmem:[%s1662_s25] sm:$0xff] }
  0x38   : > { %v507_v8 = vld [vmem:[%s383_s27] sm:$0xff]  ;;  %v505_v9 = vunpack.c.l.bf16 %v498_v6  ;;  %v503_v10 = vunpack.c.l.bf16 %v497_v7  ;;  %v506_v11 = vunpack.c.h.bf16 %v498_v6  ;;  %v504_v12 = vunpack.c.h.bf16 %v497_v7  ;;  %s1890_s24 = smov (!%p454_p13, %s1519_s24), 1  ;;  %v508_v23 = vld [vmem:[%s1668_s15] sm:$0xff]  ;;  %v509_v34 = vld [vmem:[%s1668_s15 + $0x8] sm:$0xff] }
  0x39   : > { %539 = vmatpush.msra.mxu0 %v499_v2  ;;  %559 = vmatpush.msra.mxu1 %v500_v3  ;;  %1315 = vrsqrt.f32 %v491_v13  ;;  %vm716_vm1 = vcmp.eq.f32.partialorder %v491_v13, inf  ;;  %s1685_s7 = sshll.u32 %s1890_s24, 3  ;;  %v719_v21 = vand.u32 2147483648, %v491_v13  ;;  %vm718_vm2 = vcmp.eq.f32.partialorder %v491_v13, 0.0  ;;  %v510_v37 = vld [vmem:[%s1668_s15 + $0x10] sm:$0xff] }
  0x3a   : > { %579 = vmatpush.msra.mxu2 %v501_v4  ;;  %599 = vmatpush.msra.mxu3 %v502_v5  ;;  %s460_s19 = scalar_lea.vmem %s1856_s0, %s1685_s7  ;;  %v512_v26 = vunpack.c.l.bf16 %v508_v23  ;;  %v513_v28 = vunpack.c.h.bf16 %v508_v23  ;;  %v514_v40 = vunpack.c.l.bf16 %v509_v34  ;;  %v515_v42 = vunpack.c.h.bf16 %v509_v34  ;;  %v511_v34 = vld [vmem:[%s1668_s15 + $0x18] sm:$0xff]  ;;  %s471_s29 = scalar_lea.vmem %s1859_s3, %s1685_s7 }
  0x3b   : > { %1233 = vmatmul.msk.f32.vlgmr.msra.gmra.mxu0 %vm520_vm0, %v507_v8  ;;  %1234 = vmatmul.msk.f32.vlgmr.msra.gmra.mxu1 %vm520_vm0, %v507_v8  ;;  %v1694_v25 = vld [vmem:[%s460_s19] sm:$0xff]  ;;  %v516_v46 = vunpack.c.l.bf16 %v510_v37  ;;  %v517_v49 = vunpack.c.h.bf16 %v510_v37  ;;  %s477_s2 = scalar_lea.vmem %s1862_s6, %s1685_s7 }
  0x3c   : > { %1235 = vmatmul.msk.f32.vlgmr.msra.gmra.mxu2 %vm520_vm0, %v507_v8  ;;  %1236 = vmatmul.msk.f32.vlgmr.msra.gmra.mxu3 %vm520_vm0, %v507_v8  ;;  %v685_v30 = vperm.slane %v1694_v25, 0  ;;  %v686_v31 = vperm.slane %v1694_v25, 1  ;;  %v687_v48 = vperm.slane %v1694_v25, 2  ;;  %v688_v53 = vperm.slane %v1694_v25, 3 }
  0x3d   : > { %659 = vmatpush.msrb.mxu2 %v505_v9  ;;  %619 = vmatpush.msrb.mxu0 %v503_v10  ;;  %v689_v54 = vperm.slane %v1694_v25, 4  ;;  %v690_v55 = vperm.slane %v1694_v25, 5 }
  0x3e   : > { %679 = vmatpush.msrb.mxu3 %v506_v11  ;;  %639 = vmatpush.msrb.mxu1 %v504_v12 }
  0x3f   : > { %v1316_v14 = vpop.eup %1315 }
  0x40   : > { %v710_v15 = vmul.f32 %v1316_v14, %v491_v13 }
  0x42   : > { %v711_v16 = vmul.f32 %v1316_v14, %v710_v15 }
  0x43   : > { %1237 = vmatmul.msk.f32.vlgmr.msrb.gmra.mxu0 %vm520_vm0, %v507_v8  ;;  %1238 = vmatmul.msk.f32.vlgmr.msrb.gmra.mxu1 %vm520_vm0, %v507_v8 }
  0x44   : > { %1239 = vmatmul.msk.f32.vlgmr.msrb.gmra.mxu2 %vm520_vm0, %v507_v8  ;;  %1240 = vmatmul.msk.f32.vlgmr.msrb.gmra.mxu3 %vm520_vm0, %v507_v8  ;;  %v712_v17 = vmul.f32 0.5, %v711_v16 }
  0x46   : > { %v713_v18 = vsub.f32 1.5, %v712_v17 }
  0x48   : > { %v714_v19 = vmul.f32 %v1316_v14, %v713_v18 }
  0x4a   : > { %v715_v20 = vmul.f32 %v714_v19, %v491_v13 }
  0x4c   : > { %v717_v22 = vsel %vm716_vm1, %v491_v13, %v715_v20 }
  0x4d   : > { %v1692_v24 = vsel %vm718_vm2, %v719_v21, %v717_v22 }
  0x4e   : > { %v722_v27 = vperm.slane %v1692_v24, 0  ;;  %v723_v29 = vperm.slane %v1692_v24, 1  ;;  %v724_v41 = vperm.slane %v1692_v24, 2  ;;  %v725_v43 = vperm.slane %v1692_v24, 3 }
  0x4f   : > { %v726_v47 = vperm.slane %v1692_v24, 4  ;;  %v727_v50 = vperm.slane %v1692_v24, 5 }
  0x50   : > { %v738_v32 = vmul.f32 %v722_v27, %v512_v26  ;;  %v739_v33 = vmul.f32 %v723_v29, %v513_v28  ;;  %v740_v58 = vmul.f32 %v724_v41, %v514_v40  ;;  %v741_v60 = vmul.f32 %v725_v43, %v515_v42 }
  0x51   : > { %v742_v61 = vmul.f32 %v726_v47, %v516_v46  ;;  %v743_v1 = vmul.f32 %v727_v50, %v517_v49  ;;  %v691_v46 = vperm.slane %v1694_v25, 6 }
  0xb8   : > { %v541_v35 = vpop.f32.mrf.mxu0  ;;  %v561_v36 = vpop.f32.mrf.mxu1 }
  0xb9   : > { %v701_v38 = vadd.f32 %v685_v30, %v541_v35  ;;  %v702_v39 = vadd.f32 %v686_v31, %v561_v36 }
  0xbb   : > { %v1704_v44 = vadd.f32 %v738_v32, %v701_v38  ;;  %v1706_v45 = vadd.f32 %v739_v33, %v702_v39  ;;  %v518_v38 = vunpack.c.l.bf16 %v511_v34  ;;  %v728_v39 = vperm.slane %v1692_v24, 6 }
  0xbd   : > { %v1712_v51 = vsub.f32 0.0, %v1704_v44  ;;  %v1715_v52 = vsub.f32 0.0, %v1706_v45 }
  0xbf   : > { %v786_v56 = vand.u32 2147483647, %v1712_v51  ;;  %v581_v57 = vpop.f32.mrf.mxu2  ;;  %v601_v59 = vpop.f32.mrf.mxu3  ;;  %v787_v62 = vand.u32 2147483647, %v1715_v52  ;;  %vm770_vm5 = vcmp.ne.f32.partialorder %v1712_v51, %v1712_v51  ;;  %vm771_vm6 = vcmp.ne.f32.partialorder %v1715_v52, %v1715_v52 }
  0xc0   : > { %v621_v63 = vpop.f32.mrf.mxu0  ;;  %v641_v0 = vpop.f32.mrf.mxu1  ;;  %v703_v3 = vadd.f32 %v687_v48, %v581_v57  ;;  %v704_v4 = vadd.f32 %v688_v53, %v601_v59 }
  0xc1   : > { %v794_v2 = vsub.f32 0.0, %v786_v56  ;;  %v705_v5 = vadd.f32 %v689_v54, %v621_v63  ;;  %v795_v6 = vsub.f32 0.0, %v787_v62  ;;  %v706_v7 = vadd.f32 %v690_v55, %v641_v0 }
  0xc2   : > { %v1722_v9 = vadd.f32 %v740_v58, %v703_v3  ;;  %v1724_v10 = vadd.f32 %v741_v60, %v704_v4  ;;  %v744_v54 = vmul.f32 %v728_v39, %v518_v38  ;;  %v519_v55 = vunpack.c.h.bf16 %v511_v34 }
  0xc3   : > { %v802_v8 = vmul.f32 1.442695, %v794_v2  ;;  %v1726_v11 = vadd.f32 %v742_v61, %v705_v5  ;;  %v804_v12 = vmul.f32 1.442695, %v795_v6  ;;  %v1728_v13 = vadd.f32 %v743_v1, %v706_v7 }
  0xc4   : > { %v1731_v14 = vsub.f32 0.0, %v1722_v9  ;;  %v1734_v15 = vsub.f32 0.0, %v1724_v10  ;;  %v729_v5 = vperm.slane %v1692_v24, 7  ;;  %v762_v6 = vmax.f32 %v1712_v51, 0.0 }
  0xc5   : > { %1317 = vpow2.f32 %v802_v8  ;;  %v1737_v16 = vsub.f32 0.0, %v1726_v11  ;;  %v1742_v19 = vsub.f32 0.0, %v1728_v13 }
  0xc6   : > { %1319 = vpow2.f32 %v804_v12  ;;  %v788_v17 = vand.u32 2147483647, %v1731_v14  ;;  %v789_v18 = vand.u32 2147483647, %v1734_v15  ;;  %vm772_vm8 = vcmp.ne.f32.partialorder %v1731_v14, %v1731_v14 }
  0xc7   : > { %v790_v21 = vand.u32 2147483647, %v1737_v16  ;;  %v791_v31 = vand.u32 2147483647, %v1742_v19  ;;  %v661_v49 = vpop.f32.mrf.mxu2  ;;  %vm773_vm11 = vcmp.ne.f32.partialorder %v1734_v15, %v1734_v15  ;;  %vm774_vm13 = vcmp.ne.f32.partialorder %v1737_v16, %v1737_v16 }
  0xc8   : > { %v796_v20 = vsub.f32 0.0, %v788_v17  ;;  %v797_v22 = vsub.f32 0.0, %v789_v18  ;;  %v707_v0 = vadd.f32 %v691_v46, %v661_v49  ;;  %v763_v17 = vmax.f32 %v1715_v52, 0.0 }
  0xc9   : > { %v798_v27 = vsub.f32 0.0, %v790_v21  ;;  %v799_v37 = vsub.f32 0.0, %v791_v31  ;;  %vm775_vm14 = vcmp.ne.f32.partialorder %v1742_v19, %v1742_v19 }
  0xca   : > { %v806_v26 = vmul.f32 1.442695, %v796_v20  ;;  %v808_v30 = vmul.f32 1.442695, %v797_v22  ;;  %v692_v20 = vperm.slane %v1694_v25, 7  ;;  %v764_v25 = vmax.f32 %v1731_v14, 0.0 }
  0xcb   : > { %v1318_v23 = vpop.eup %1317  ;;  %v810_v36 = vmul.f32 1.442695, %v798_v27  ;;  %v812_v43 = vmul.f32 1.442695, %v799_v37 }
  0xcc   : > { %v1320_v28 = vpop.eup %1319  ;;  %v818_v29 = vadd.f32 1.0, %v1318_v23  ;;  %v821_v32 = vmul.f32 -0.5, %v1318_v23  ;;  %1321 = vpow2.f32 %v806_v26  ;;  %v824_v41 = vand.u32 2147483647, %v1318_v23 }
  0xcd   : > { %v827_v33 = vadd.f32 1.0, %v1320_v28  ;;  %v830_v35 = vmul.f32 -0.5, %v1320_v28  ;;  %v833_v48 = vand.u32 2147483647, %v1320_v28  ;;  %v1767_v26 = vadd.f32 %v744_v54, %v707_v0 }
  0xce   : > { %1323 = vlog2.f32 %v818_v29  ;;  %v822_v40 = vadd.f32 1.0, %v821_v32  ;;  %vm1749_vm3 = vcmp.lt.f32.partialorder %v824_v41, 0.0004427343  ;;  %v681_v29 = vpop.f32.mrf.mxu3  ;;  %v765_v54 = vmax.f32 %v1734_v15, 0.0 }
  0xcf   : > { %1325 = vlog2.f32 %v827_v33  ;;  %v831_v42 = vadd.f32 1.0, %v830_v35  ;;  %vm1755_vm4 = vcmp.lt.f32.partialorder %v833_v48, 0.0004427343  ;;  %v1779_v37 = vsub.f32 0.0, %v1767_v26 }
  0xd0   : > { %1327 = vpow2.f32 %v808_v30  ;;  %v823_v58 = vmul.f32 %v1318_v23, %v822_v40  ;;  %v745_v30 = vmul.f32 %v729_v5, %v519_v55  ;;  %v708_v38 = vadd.f32 %v692_v20, %v681_v29 }
  0xd1   : > { %1329 = vpow2.f32 %v810_v36  ;;  %v832_v63 = vmul.f32 %v1320_v28, %v831_v42  ;;  %vm776_vm0 = vcmp.ne.f32.partialorder %v1779_v37, %v1779_v37 }
  0xd2   : > { %v1322_v47 = vpop.eup %1321  ;;  %1331 = vpow2.f32 %v812_v43 }
  0xd3   : > { %v836_v53 = vadd.f32 1.0, %v1322_v47  ;;  %v839_v60 = vmul.f32 -0.5, %v1322_v47  ;;  %v842_v23 = vand.u32 2147483647, %v1322_v47 }
  0xd4   : > { %v1324_v50 = vpop.eup %1323 }
  0xd5   : > { %v1326_v56 = vpop.eup %1325  ;;  %v820_v57 = vmul.f32 0.6931472, %v1324_v50  ;;  %1333 = vlog2.f32 %v836_v53  ;;  %v840_v18 = vadd.f32 1.0, %v839_v60  ;;  %vm843_vm7 = vcmp.lt.f32.partialorder %v842_v23, 0.0004427343  ;;  %v492_v53 = vld [vmem:[%s471_s29] sm:$0xff] }
  0xd6   : > { %v1328_v61 = vpop.eup %1327  ;;  %v829_v62 = vmul.f32 0.6931472, %v1326_v56  ;;  %v1791_v56 = vadd.f32 %v745_v30, %v708_v38 }
  0xd7   : > { %v1330_v1 = vpop.eup %1329  ;;  %v826_v2 = vsel %vm1749_vm3, %v823_v58, %v820_v57  ;;  %v845_v4 = vadd.f32 1.0, %v1328_v61  ;;  %v848_v8 = vmul.f32 -0.5, %v1328_v61  ;;  %v841_v34 = vmul.f32 %v1322_v47, %v840_v18 }
  0xd8   : > { %v835_v7 = vsel %vm1755_vm4, %v832_v63, %v829_v62  ;;  %v854_v12 = vadd.f32 1.0, %v1330_v1  ;;  %v1765_v21 = vpop.eup %1331  ;;  %v890_v22 = vadd.f32 %v826_v2, %v762_v6  ;;  %v857_v27 = vmul.f32 -0.5, %v1330_v1 }
  0xd9   : > { %1335 = vlog2.f32 %v845_v4  ;;  %v891_v24 = vadd.f32 %v835_v7, %v763_v17  ;;  %v863_v28 = vadd.f32 1.0, %v1765_v21  ;;  %v849_v32 = vadd.f32 1.0, %v848_v8 }
  0xda   : > { %1337 = vlog2.f32 %v854_v12  ;;  %v851_v35 = vand.u32 2147483647, %v1328_v61  ;;  %v1776_v36 = vsel %vm770_vm5, %v1712_v51, %v890_v22  ;;  %v858_v42 = vadd.f32 1.0, %v857_v27 }
  0xdb   : > { %v1334_v31 = vpop.eup %1333  ;;  %1339 = vlog2.f32 %v863_v28  ;;  %v899_v40 = vsel %vm771_vm6, %v1715_v52, %v891_v24  ;;  %v860_v43 = vand.u32 2147483647, %v1330_v1  ;;  %v850_v51 = vmul.f32 %v1328_v61, %v849_v32 }
  0xdc   : > { %v838_v33 = vmul.f32 0.6931472, %v1334_v31  ;;  %v866_v49 = vmul.f32 -0.5, %v1765_v21  ;;  %vm852_vm9 = vcmp.lt.f32.partialorder %v851_v35, 0.0004427343  ;;  %v906_v58 = vsub.f32 0.0, %v1776_v36 }
  0xdd   : > { %v792_v52 = vand.u32 2147483647, %v1779_v37  ;;  %v907_v59 = vsub.f32 0.0, %v899_v40  ;;  %v859_v61 = vmul.f32 %v1330_v1, %v858_v42  ;;  %vm861_vm10 = vcmp.lt.f32.partialorder %v860_v43, 0.0004427343 }
  0xde   : > { %v844_v41 = vsel %vm843_vm7, %v841_v34, %v838_v33  ;;  %v867_v63 = vadd.f32 1.0, %v866_v49  ;;  %v493_v2 = vunpack.c.l.bf16 %v492_v53  ;;  %v869_v4 = vand.u32 2147483647, %v1765_v21 }
  0xdf   : > { %v1336_v39 = vpop.eup %1335  ;;  %v892_v47 = vadd.f32 %v844_v41, %v764_v25  ;;  %v800_v0 = vsub.f32 0.0, %v792_v52  ;;  %v766_v6 = vmax.f32 %v1737_v16, 0.0  ;;  %v1798_v8 = vsub.f32 0.0, %v1791_v56 }
  0xe0   : > { %v1338_v46 = vpop.eup %1337  ;;  %v847_v48 = vmul.f32 0.6931472, %v1336_v39  ;;  %v922_v12 = vsub.f32 %v906_v58, %v1704_v44  ;;  %v923_v1 = vsub.f32 %v907_v59, %v1706_v45  ;;  %v868_v20 = vmul.f32 %v1765_v21, %v867_v63 }
  0xe1   : > { %v856_v50 = vmul.f32 0.6931472, %v1338_v46  ;;  %v1340_v57 = vpop.eup %1339  ;;  %v900_v60 = vsel %vm772_vm8, %v1731_v14, %v892_v47  ;;  %v814_v14 = vmul.f32 1.442695, %v800_v0  ;;  %v948_v22 = vperm.slane %v493_v2, 0 }
  0xe2   : > { %v853_v55 = vsel %vm852_vm9, %v850_v51, %v847_v48  ;;  %v908_v5 = vsub.f32 0.0, %v900_v60  ;;  %v865_v7 = vmul.f32 0.6931472, %v1340_v57  ;;  %vm870_vm12 = vcmp.lt.f32.partialorder %v869_v4, 0.0004427343 }
  0xe3   : > { %v893_v62 = vadd.f32 %v853_v55, %v765_v54  ;;  %v862_v3 = vsel %vm861_vm10, %v859_v61, %v856_v50  ;;  %1341 = vpow2.f32 %v814_v14  ;;  %v793_v27 = vand.u32 2147483647, %v1798_v8 }
  0xe4   : > { %v894_v18 = vadd.f32 %v862_v3, %v766_v6  ;;  %v924_v23 = vsub.f32 %v908_v5, %v1722_v9  ;;  %v871_v24 = vsel %vm870_vm12, %v868_v20, %v865_v7  ;;  %v949_v44 = vperm.slane %v493_v2, 2 }
  0xe5   : > { %v901_v17 = vsel %vm773_vm11, %v1734_v15, %v893_v62  ;;  %v767_v45 = vmax.f32 %v1742_v19, 0.0  ;;  %v930_v29 = vmax.f32 %v922_v12, -100.0  ;;  %v931_v15 = vmax.f32 %v923_v1, -100.0 }
  0xe6   : > { %v909_v28 = vsub.f32 0.0, %v901_v17  ;;  %v902_v30 = vsel %vm774_vm13, %v1737_v16, %v894_v18  ;;  %v801_v21 = vsub.f32 0.0, %v793_v27  ;;  %v964_v31 = vperm.slane %v948_v22, 0 }
  0xe7   : > { %v950_v25 = vperm.slane %v493_v2, 4  ;;  %v895_v32 = vadd.f32 %v871_v24, %v767_v45  ;;  %v914_v9 = vmax.f32 %v906_v58, -100.0  ;;  %v915_v33 = vmax.f32 %v907_v59, -100.0 }
  0xe8   : > { %v932_v34 = vmax.f32 %v924_v23, -100.0  ;;  %v816_v35 = vmul.f32 1.442695, %v801_v21  ;;  %v965_v36 = vperm.slane %v949_v44, 0  ;;  %v925_v38 = vsub.f32 %v909_v28, %v1724_v10 }
  0xe9   : > { %v910_v39 = vsub.f32 0.0, %v902_v30  ;;  %v1342_v40 = vpop.eup %1341  ;;  %v938_v41 = vsub.f32 %v914_v9, %v930_v29  ;;  %v939_v42 = vsub.f32 %v915_v33, %v931_v15  ;;  %v916_v43 = vmax.f32 %v908_v5, -100.0 }
  0xea   : > { %1343 = vpow2.f32 %v816_v35  ;;  %v1815_v16 = vunpack.c.h.bf16 %v492_v53  ;;  %v903_v46 = vsel %vm775_vm14, %v1742_v19, %v895_v32  ;;  %v872_v47 = vadd.f32 1.0, %v1342_v40 }
  0xeb   : > { %v940_v48 = vsub.f32 %v916_v43, %v932_v34  ;;  %v966_v51 = vperm.slane %v950_v25, 0  ;;  %v951_v49 = vperm.slane %v493_v2, 6  ;;  %v875_v50 = vmul.f32 -0.5, %v1342_v40 }
  0xec   : > { %v933_v54 = vmax.f32 %v925_v38, -100.0  ;;  %v926_v10 = vsub.f32 %v910_v39, %v1726_v11  ;;  %1345 = vlog2.f32 %v872_v47  ;;  %v972_v55 = vmul.f32 %v964_v31, %v938_v41 }
  0xed   : > { %v973_v52 = vmul.f32 %v965_v36, %v939_v42  ;;  %v911_v57 = vsub.f32 0.0, %v903_v46  ;;  %v917_v58 = vmax.f32 %v909_v28, -100.0  ;;  %v952_v59 = vperm.slane %v1815_v16, 0 }
  0xee   : > { %v974_v53 = vmul.f32 %v966_v51, %v940_v48  ;;  %v967_v61 = vperm.slane %v951_v49, 0  ;;  %v876_v62 = vadd.f32 1.0, %v875_v50  ;;  %v934_v63 = vmax.f32 %v926_v10, -100.0 }
  0xef   : > { %v941_v19 = vsub.f32 %v917_v58, %v933_v54  ;;  %v878_v0 = vand.u32 2147483647, %v1342_v40  ;;  %v980_v2 = vadd.f32 %v972_v55, %v930_v29  ;;  %v981_v4 = vadd.f32 %v973_v52, %v931_v15 }
  0xf0   : > { %v1344_v60 = vpop.eup %1343  ;;  %v927_v5 = vsub.f32 %v911_v57, %v1728_v13  ;;  %v918_v7 = vmax.f32 %v910_v39, -100.0  ;;  %v968_v12 = vperm.slane %v952_v59, 0  ;;  %v982_v14 = vadd.f32 %v974_v53, %v932_v34 }
  0xf1   : > { %v881_v3 = vadd.f32 1.0, %v1344_v60  ;;  %v884_v11 = vmul.f32 -0.5, %v1344_v60  ;;  %v768_v1 = vmax.f32 %v1779_v37, 0.0  ;;  %v877_v18 = vmul.f32 %v1342_v40, %v876_v62 }
  0xf2   : > { %v1346_v6 = vpop.eup %1345  ;;  %v975_v20 = vmul.f32 %v967_v61, %v941_v19  ;;  %v942_v22 = vsub.f32 %v918_v7, %v934_v63  ;;  %vm879_vm15 = vcmp.lt.f32.partialorder %v878_v0, 0.0004427343  ;;  %v953_v23 = vperm.slane %v1815_v16, 2 }
  0xf3   : > { %1347 = vlog2.f32 %v881_v3  ;;  %v874_v17 = vmul.f32 0.6931472, %v1346_v6  ;;  %v1023_v24 = vadd.f32 %v981_v4, %v980_v2  ;;  %v935_v27 = vmax.f32 %v927_v5, -100.0 }
  0xf4   : > { %v885_v28 = vadd.f32 1.0, %v884_v11  ;;  %v887_v45 = vand.u32 2147483647, %v1344_v60  ;;  %v919_v15 = vmax.f32 %v911_v57, -100.0  ;;  %v954_v30 = vperm.slane %v1815_v16, 4 }
  0xf5   : > { %v880_v44 = vsel %vm879_vm15, %v877_v18, %v874_v17  ;;  %v1024_v29 = vadd.f32 %v1023_v24, %v982_v14  ;;  %v983_v31 = vadd.f32 %v975_v20, %v933_v54  ;;  %v976_v25 = vmul.f32 %v968_v12, %v942_v22 }
  0xf6   : > { %v896_v13 = vadd.f32 %v880_v44, %v768_v1  ;;  %v969_v9 = vperm.slane %v953_v23, 0  ;;  %v943_v33 = vsub.f32 %v919_v15, %v935_v27  ;;  %v886_v36 = vmul.f32 %v1344_v60, %v885_v28 }
  0xf7   : > { %v769_v38 = vmax.f32 %v1798_v8, 0.0  ;;  %vm888_vm1 = vcmp.lt.f32.partialorder %v887_v45, 0.0004427343  ;;  %v1025_v41 = vadd.f32 %v1024_v29, %v983_v31  ;;  %vm777_vm2 = vcmp.ne.f32.partialorder %v1798_v8, %v1798_v8 }
  0xf8   : > { %v904_v32 = vsel %vm776_vm0, %v1779_v37, %v896_v13  ;;  %v970_v43 = vperm.slane %v954_v30, 0  ;;  %v984_v46 = vadd.f32 %v976_v25, %v934_v63  ;;  %v977_v48 = vmul.f32 %v969_v9, %v943_v33 }
  0xf9   : > { %v1348_v21 = vpop.eup %1347  ;;  %v912_v34 = vsub.f32 0.0, %v904_v32  ;;  %v955_v49 = vperm.slane %v1815_v16, 6  ;;  %vm1032_vm3 = vcmask 7168  }
  0xfa   : > { %v883_v35 = vmul.f32 0.6931472, %v1348_v21  ;;  %v1026_v10 = vadd.f32 %v1025_v41, %v984_v46  ;;  %v985_v52 = vadd.f32 %v977_v48, %v935_v27 }
  0xfb   : > { %v928_v39 = vsub.f32 %v912_v34, %v1767_v26  ;;  %v920_v47 = vmax.f32 %v912_v34, -100.0  ;;  %v971_v57 = vperm.slane %v955_v49, 0 }
  0xfc   : > { %v889_v40 = vsel %vm888_vm1, %v886_v36, %v883_v35  ;;  %v1027_v53 = vadd.f32 %v1026_v10, %v985_v52 }
  0xfd   : > { %v897_v42 = vadd.f32 %v889_v40, %v769_v38  ;;  %v936_v37 = vmax.f32 %v928_v39, -100.0 }
  0xff   : > { %v905_v51 = vsel %vm777_vm2, %v1798_v8, %v897_v42  ;;  %v944_v50 = vsub.f32 %v920_v47, %v936_v37 }
 0x100   : > { %v913_v54 = vsub.f32 0.0, %v905_v51 }
 0x101   : > { %v978_v55 = vmul.f32 %v970_v43, %v944_v50 }
 0x102   : > { %v929_v26 = vsub.f32 %v913_v54, %v1791_v56  ;;  %v921_v58 = vmax.f32 %v913_v54, -100.0 }
 0x103   : > { %v986_v60 = vadd.f32 %v978_v55, %v936_v37 }
 0x104   : > { %v937_v59 = vmax.f32 %v929_v26, -100.0 }
 0x105   : > { %v1028_v19 = vadd.f32 %v1027_v53, %v986_v60 }
 0x106   : > { %v945_v61 = vsub.f32 %v921_v58, %v937_v59 }
 0x108   : > { %v979_v62 = vmul.f32 %v971_v57, %v945_v61 }
 0x10a   : > { %v987_v63 = vadd.f32 %v979_v62, %v937_v59 }
 0x10c   : > { %v1029_v8 = vadd.f32 %v1028_v19, %v987_v63 }
 0x10e   : > { %1030 = vadd.xlane.f32.xlu0 %v1029_v8 }
 0x181   : > { %v1031_v16 = vpop.xlane.xlu0 %1030 }
 0x182   : > { %1033 = vst.msk [vmem:[%s477_s2] sm:$0xff] %vm1032_vm3, %v1031_v16 }
 0x183 PF: > { %s25_s26 = sadd.s32 1, %s1527_s26   ;;  %s1882_s24 = sld [smem:[#allocation13_spill]] }
 0x184   : > { %p22_p0 = scmp.ge.s32.totalorder %s25_s26, 4   ;;  %s1883_s25 = sld [smem:[#allocation14_spill]] }
 0x185   : > { %s1884_s21 = smov %s1511_s22  ;;  %s1885_s22 = smov %s1515_s23 }
 0x186   : > { %s1886_s23 = smov %s1611_s8  ;;  %24 = sbr.rel (!%p22_p0) target bundleno = 12 (0xc), region = 135 }
 0x18b   :  { %1053 = vsyncpa [#allocation4], 1 }
 0x18c   :  { %1055 = vsyncpa [#allocation4 + $0x1], 1 }
 0x18d   :  { %1056 = vsyncpa [#allocation6], 1 }
 0x18e   :  { %1058 = vsyncpa [#allocation6 + $0x1], 1 }
 0x18f   :  { %1059 = vsyncpa [#allocation9], 1 }
 0x190   :  { %1061 = vsyncpa [#allocation9 + $0x1], 1 }

</bundles_post_ra>
